<compile_context>
chip_gen: v7x
topology: tpu7x:2x2x1
jax: 0.10.0
libtpu: 0.0.40
codegen_flags: <defaults>
</compile_context>

<pallas_src>
import functools

import jax
import jax.numpy as jnp
from jax.experimental import pallas as pl
from jax.experimental.pallas import tpu as pltpu


# ---------------------------------------------------------------------------
# Kernel: ReLU(x @ W' + b') with the BN-eval affine + Linear bias pre-folded
# into W'/b'.  Dropout(p=0.1) in eval mode is the identity.
# ---------------------------------------------------------------------------
def linear_layer_kernel(x_ref, w_ref, b_ref, o_ref):
    h = jnp.dot(x_ref[...], w_ref[...], preferred_element_type=jnp.float32)  # MXU, f32 acc
    h = h + b_ref[...]                  # bias + BN shift, f32
    h = jnp.maximum(h, 0.0)             # ReLU, f32
    o_ref[...] = h.astype(o_ref.dtype)  # single cast at the store (bf16 out optional)


# ---------------------------------------------------------------------------
# One-time (weight-load-time) preprocessing: fold BN-eval affine + linear bias
# into W'/b', pad c_out to a lane-dense multiple of 128, cast W' to the MXU
# input dtype.  Keeping this out of the per-forward path removes the extra
# weight-side HBM traffic and XLA dispatches the review flagged.
# ---------------------------------------------------------------------------
def fold_params(params, *, use_bf16=True, eps=1e-5):
    scale = params["bn_gamma"] / jnp.sqrt(params["bn_running_var"] + eps)   # (c_out,)
    shift = params["bn_beta"] - params["bn_running_mean"] * scale           # (c_out,)
    w = params["w"] * scale[None, :]                                        # (c_in, c_out)
    b = params["b"] * scale + shift                                         # (c_out,)

    c_in, c_out = w.shape
    c_pad = pl.cdiv(c_out, 128) * 128
    if c_pad != c_out:
        # Zero-padded columns stay exactly 0 through bias+ReLU and are sliced off.
        w = jnp.pad(w, ((0, 0), (0, c_pad - c_out)))
        b = jnp.pad(b, (0, c_pad - c_out))

    in_dtype = jnp.bfloat16 if use_bf16 else jnp.float32  # bf16 = fast MXU path on v5e/v6e/v7x
    return {
        "w": w.astype(in_dtype),                        # (c_in, c_pad) resident operand
        "b": b.reshape(1, c_pad).astype(jnp.float32),   # (1, c_pad)   f32 epilogue operand
        "c_out": c_out,                                 # python int (static)
    }


# ---------------------------------------------------------------------------
# Jitted per-call wrapper (x pad/cast + pallas_call + slice fuse under jit).
# ---------------------------------------------------------------------------
@functools.partial(jax.jit, static_argnames=("c_out", "tb_max", "tn_max", "out_dtype"))
def _linear_layer_fwd(x, w, b, *, c_out, tb_max, tn_max, out_dtype):
    B, c_in = x.shape
    c_in_w, c_pad = w.shape
    assert c_in == c_in_w, "x / folded-W feature mismatch"

    in_dtype = w.dtype
    pack = 16 if in_dtype == jnp.bfloat16 else 8  # sublane packing for the input dtype

    # Batch tile: as large as useful (amortize ~0.35us/grid-step, approach HBM roofline),
    # but keep >=2 batch grid steps when B allows so megacore sharding / DMA pipelining engage.
    tb = max(pack, (min(tb_max, pl.cdiv(B, pack) * pack) // pack) * pack)
    while tb > pack and pl.cdiv(B, tb) < 2:
        tb = max(pack, ((tb // 2) // pack) * pack)
    B_pad = pl.cdiv(B, tb) * tb

    # c_out tile: lane-dense multiple of 128 dividing c_pad (bounds the resident W'
    # VMEM footprint so the same kernel scales past toy sizes, esp. v7x's 64 MiB VMEM).
    tn = max(128, min((tn_max // 128) * 128, c_pad))
    while c_pad % tn != 0:
        tn -= 128

    xp = x
    if B_pad != B:
        xp = jnp.pad(xp, ((0, B_pad - B), (0, 0)))
    xp = xp.astype(in_dtype)

    grid = (B_pad // tb, c_pad // tn)

    isz_in = jnp.dtype(in_dtype).itemsize
    isz_out = jnp.dtype(out_dtype).itemsize

    # Mem-bound at small c_in: tell XLA the true flop/byte mix so it schedules around us.
    cost = pl.CostEstimate(
        flops=2 * B_pad * c_in * c_pad,
        transcendentals=0,
        bytes_accessed=(B_pad * c_in * isz_in        # x
                        + c_in * c_pad * isz_in      # W'
                        + c_pad * 4                  # b'
                        + B_pad * c_pad * isz_out),  # out
    )

    # Explicit VMEM budget (double-buffered x/out tiles + resident W'/b' + f32 temp),
    # floored at the 32 MiB scoped default, capped conservatively for v7x (64 MiB phys).
    # Note: W'/b' have constant index maps so Mosaic does not re-DMA them per step.
    lane_cin = max(c_in, 128)  # c_in is lane-padded inside VMEM
    vmem_bytes = (2 * tb * lane_cin * isz_in
                  + 2 * c_in * tn * isz_in
                  + 2 * 8 * tn * 4
                  + 2 * tb * tn * isz_out
                  + 2 * tb * tn * 4)
    vmem_limit = min(max(int(vmem_bytes * 1.5) + (4 << 20), 32 << 20), 64 << 20)

    out = pl.pallas_call(
        linear_layer_kernel,
        out_shape=jax.ShapeDtypeStruct((B_pad, c_pad), out_dtype),
        grid_spec=pltpu.PrefetchScalarGridSpec(
            num_scalar_prefetch=0,
            grid=grid,
            in_specs=[
                pl.BlockSpec((tb, c_in), lambda i, j: (i, 0)),   # x tile over batch
                pl.BlockSpec((c_in, tn), lambda i, j: (0, j)),   # W' column tile (resident per j)
                pl.BlockSpec((1, tn), lambda i, j: (0, j)),      # b' column tile
            ],
            out_specs=pl.BlockSpec((tb, tn), lambda i, j: (i, j)),
        ),
        compiler_params=pltpu.CompilerParams(
            dimension_semantics=("parallel", "parallel"),
            vmem_limit_bytes=vmem_limit,
        ),
        cost_estimate=cost,
    )(xp, w, b)

    return out[:B, :c_out]


def linear_layer_forward(x, folded, *, tb=512, tn=512, out_dtype=None):
    """Eval-mode forward.  `folded` comes from fold_params() (computed once at load)."""
    out_dtype = jnp.dtype(x.dtype if out_dtype is None else out_dtype)
    return _linear_layer_fwd(x, folded["w"], folded["b"],
                             c_out=folded["c_out"], tb_max=tb, tn_max=tn,
                             out_dtype=out_dtype)


# ---------------------------------------------------------------------------
# Synthetic params + pure-JAX reference (eval-mode, f32).
# ---------------------------------------------------------------------------
def init_params(key, c_in, c_out):
    """Deterministic synthetic init (shapes match nn.Linear + nn.BatchNorm1d)."""
    k1, k2, k3, k4, k5, k6 = jax.random.split(key, 6)
    bound = 1.0 / jnp.sqrt(c_in)
    return {
        # Linear weight stored pre-transposed as (c_in, c_out) so kernel does x @ W.
        "w": jax.random.uniform(k1, (c_in, c_out), jnp.float32, -bound, bound),
        "b": jax.random.uniform(k2, (c_out,), jnp.float32, -bound, bound),
        "bn_gamma": jax.random.uniform(k3, (c_out,), jnp.float32, 0.5, 1.5),
        "bn_beta": jax.random.uniform(k4, (c_out,), jnp.float32, -0.5, 0.5),
        "bn_running_mean": jax.random.uniform(k5, (c_out,), jnp.float32, -0.1, 0.1),
        "bn_running_var": jax.random.uniform(k6, (c_out,), jnp.float32, 0.8, 1.2),
    }


def linear_layer_reference(x, params):
    """Pure-JAX eval-mode reference (f32) for correctness checking."""
    eps = 1e-5
    y = x @ params["w"] + params["b"]
    scale = params["bn_gamma"] / jnp.sqrt(params["bn_running_var"] + eps)
    shift = params["bn_beta"] - params["bn_running_mean"] * scale
    y = y * scale + shift
    y = jnp.maximum(y, 0.0)
    # Dropout(p=0.1) eval mode -> identity
    return y


if __name__ == "__main__":
    B, C_IN, C_OUT = 512, 32, 256   # small demo shape; >=2 batch grid steps after clamping

    key = jax.random.PRNGKey(0)
    kx, kp = jax.random.split(key)
    x = jax.random.normal(kx, (B, C_IN), jnp.float32)
    params = init_params(kp, C_IN, C_OUT)

    ref = linear_layer_reference(x, params)

    # f32 weights/inputs, f32 output: tight check.
    folded_f32 = fold_params(params, use_bf16=False)
    out_f32 = jax.block_until_ready(linear_layer_forward(x, folded_f32, out_dtype=jnp.float32))
    assert out_f32.shape == (B, C_OUT)
    assert jnp.allclose(out_f32, ref, atol=1e-3, rtol=1e-3), "f32 kernel mismatch vs reference"

    # bf16 MXU-input path (fast path on v5e/v6e/v7x; accumulation stays f32): looser check.
    folded_bf16 = fold_params(params, use_bf16=True)
    out_b = jax.block_until_ready(linear_layer_forward(x, folded_bf16, out_dtype=jnp.float32))
    assert out_b.shape == (B, C_OUT)
    assert jnp.allclose(out_b, ref, atol=5e-2, rtol=5e-2), "bf16-input kernel mismatch vs reference"

    # bf16 output (halves HBM writeback on this store-bound shape).
    out_bo = jax.block_until_ready(linear_layer_forward(x, folded_bf16, out_dtype=jnp.bfloat16))
    assert out_bo.shape == (B, C_OUT) and out_bo.dtype == jnp.bfloat16
    assert jnp.allclose(out_bo.astype(jnp.float32), ref, atol=1e-1, rtol=1e-1), \
        "bf16-output kernel mismatch vs reference"

    print("KERNEL_OK")
</pallas_src>

<mosaic_0001>
module attributes {stable_mosaic.version = 11 : i64} {
  func.func @linear_layer_kernel(%arg0: i32, %arg1: i32, %arg2: memref<256x32xf32, #tpu.memory_space<vmem>>, %arg3: memref<32x256xf32, #tpu.memory_space<vmem>>, %arg4: memref<1x256xf32, #tpu.memory_space<vmem>>, %arg5: memref<256x256xf32, #tpu.memory_space<vmem>>) attributes {dimension_semantics = [#tpu.dimension_semantics<parallel>, #tpu.dimension_semantics<parallel>], iteration_bounds = array<i64: 2, 1>, scalar_prefetch = 0 : i64, scratch_operands = 0 : i64, tpu.core_type = #tpu.core_type<tc>, window_params = [{transform_indices = @transform_0, window_bounds = array<i64: 256, 32>}, {transform_indices = @transform_1, window_bounds = array<i64: 32, 256>}, {transform_indices = @transform_2, window_bounds = array<i64: 1, 256>}, {transform_indices = @transform_3, window_bounds = array<i64: 256, 256>}]} {
    %c0 = arith.constant 0 : index
    %c0_0 = arith.constant 0 : index
    %0 = vector.load %arg2[%c0, %c0_0] : memref<256x32xf32, #tpu.memory_space<vmem>>, vector<256x32xf32>
    %c0_1 = arith.constant 0 : index
    %c0_2 = arith.constant 0 : index
    %1 = vector.load %arg3[%c0_1, %c0_2] : memref<32x256xf32, #tpu.memory_space<vmem>>, vector<32x256xf32>
    %cst = arith.constant dense<0.000000e+00> : vector<256x256xf32>
    %2 = tpu.matmul %0, %1, %cst {dimension_numbers = #tpu.dot_dimension_numbers<[1], [0], [0], [1], [0, 0, 1, 1], [], []>} : vector<256x32xf32>, vector<32x256xf32>, vector<256x256xf32> -> vector<256x256xf32>
    %c0_3 = arith.constant 0 : index
    %c0_4 = arith.constant 0 : index
    %3 = vector.load %arg4[%c0_3, %c0_4] : memref<1x256xf32, #tpu.memory_space<vmem>>, vector<1x256xf32>
    %4 = vector.broadcast %3 : vector<1x256xf32> to vector<256x256xf32>
    %5 = arith.addf %2, %4 : vector<256x256xf32>
    %cst_5 = arith.constant 0.000000e+00 : f32
    %6 = vector.broadcast %cst_5 : f32 to vector<256x256xf32>
    %7 = arith.maximumf %5, %6 : vector<256x256xf32>
    %c0_6 = arith.constant 0 : index
    %c0_7 = arith.constant 0 : index
    %8 = vector.load %arg5[%c0_6, %c0_7] : memref<256x256xf32, #tpu.memory_space<vmem>>, vector<256x256xf32>
    tpu.vector_store %arg5[%c0_6, %c0_7], %7 {strides = array<i32>} : memref<256x256xf32, #tpu.memory_space<vmem>>, vector<256x256xf32>,
    return
  }
  func.func @transform_0(%arg0: i32, %arg1: i32) -> (i32, i32) {
    %c0_i32 = arith.constant 0 : i32
    %c0_i32_0 = arith.constant 0 : i32
    return %arg0, %c0_i32 : i32, i32
  }
  func.func @transform_1(%arg0: i32, %arg1: i32) -> (i32, i32) {
    %c0_i32 = arith.constant 0 : i32
    %c0_i32_0 = arith.constant 0 : i32
    return %c0_i32, %arg1 : i32, i32
  }
  func.func @transform_2(%arg0: i32, %arg1: i32) -> (i32, i32) {
    %c0_i32 = arith.constant 0 : i32
    %c0_i32_0 = arith.constant 0 : i32
    return %c0_i32, %arg1 : i32, i32
  }
  func.func @transform_3(%arg0: i32, %arg1: i32) -> (i32, i32) {
    %c0_i32 = arith.constant 0 : i32
    return %arg0, %arg1 : i32, i32
  }
}

</mosaic_0001>

<bundles_post_ra>
// kernel: _linear_layer_fwd.1
= control target key start
LH: loop header
LB: loop body
LE: loop exit
PB: predicated region body
PF: predicated region fallthrough
CT: control target
= control target key end

     0   :  { %8 = vsyncpa [#allocation3], 0  ;;  %s1481_s0 = inlined_call_operand.vmem [shape: f32[512,32], index: 0, kind: input, shape index: {}]   ;;  %s1482_s1 = inlined_call_operand.vmem [shape: f32[32,256], index: 1, kind: input, shape index: {}]   ;;  %s1483_s2 = inlined_call_operand.vmem [shape: f32[1,256], index: 2, kind: input, shape index: {}]   ;;  %s1484_s3 = inlined_call_operand.hbm [shape: f32[512,256], index: 3, kind: output, shape index: {}]  }
   0x1   :  { %10 = vsyncpa [#allocation3 + $0x1], 0  ;;  %s1103_s12 = smov 0   ;;  %s1105_s13 = smov 0  }
   0x2   :  { %s1107_s14 = smov 0   ;;  %s1109_s15 = smov 0  }
   0x3   :  { %s1111_s16 = smov 0   ;;  %s1113_s17 = smov 0  }
   0x4 LB: > { %s879_s18 = sadd.s32 4294967295, %s1077_s17   ;;  %s880_s19 = sadd.s32 4294967294, %s1077_s17   ;;  %s1077_s17 = sphi %s1113_s17, %s16_s17   ;;  %s1073_s16 = sphi %s1111_s16, %s1491_s16   ;;  %s1069_s15 = sphi %s1109_s15, %s1490_s15   ;;  %s1065_s14 = sphi %s1107_s14, %s1489_s14   ;;  %s1061_s13 = sphi %s1105_s13, %s1488_s13   ;;  %s1057_s12 = sphi %s1103_s12, %s1487_s12  }
   0x5   : > { %s28_s20 = sadd.s32 1, %s1073_s16  ;;  %s115_s21 = sadd.s32 1, %s1065_s14 }
   0x6   : > { %p30_p0 = scmp.ge.s32.totalorder %s28_s20, 2  ;;  %p125_p1 = scmp.ne.s32.totalorder %s1065_s14, %s1061_s13 }
   0x7   : > { %p126_p2 = scmp.eq.s32.totalorder %s879_s18, 1  ;;  %p131_p3 = scmp.ne.s32.totalorder %s1061_s13, %s1057_s12 }
   0x8   : > { %s1493_s20 = smov (%p30_p0, %s28_s20), 0  ;;  %p132_p5 = scmp.eq.s32.totalorder %s880_s19, 1 }
   0x9   : > { %p1143_p4 = por %p126_p2, %p125_p1  ;;  %s110_s23 = ssub.s32 %s1073_s16, %s1493_s20 }
   0xa   : > { %p885_p6 = scmp.ge.s32.totalorder %s1077_s17, 1  ;;  %p113_p7 = scmp.eq.s32.totalorder %s110_s23, 0 }
   0xb   : > { %p1150_p8 = por %p132_p5, %p131_p3  ;;  %p176_p9 = scmp.lt.s32.totalorder %s1077_s17, 3 }
   0xc   : > { %s1156_s25 = scalar_select %p113_p7, %s1065_s14, %s115_s21  }
   0xd   : > { %p177_p10 = pnand %p885_p6, %p176_p9 }
   0xe   : > { %v261_v0 = vld [vmem:[%s1482_s1 + $0x8] sm:$0xff] (!%p177_p10)  ;;  %v263_v1 = vld [vmem:[%s1482_s1 + $0x18] sm:$0xff] (!%p177_p10)  ;;  %v260_v2 = vld [vmem:[%s1482_s1] sm:$0xff] (!%p177_p10)  ;;  %s887_s5 = sshll.u32 (!%p177_p10), %s1069_s15, 5  ;;  %v1079_v7 = vmov (!%p177_p10), 0.0   ;;  %vm280_vm0 = vcmask (!%p177_p10), 261120   ;;  %v270_v45 = vlaneseq (!%p177_p10) }
   0xf   : > { %180 = sbr.rel (%p177_p10) target bundleno = 319 (0x13f), region = 32  ;;  %v929_v3 = vpack.c.bf16 (!%p177_p10), %v263_v1, %v261_v0  ;;  %v262_v4 = vld [vmem:[%s1482_s1 + $0x10] sm:$0xff] (!%p177_p10)  ;;  %v265_v5 = vld [vmem:[%s1482_s1 + $0x28] sm:$0xff] (!%p177_p10)  ;;  %v267_v6 = vld [vmem:[%s1482_s1 + $0x38] sm:$0xff] (!%p177_p10)  ;;  %441 = vmatprep.mubr.f32.mxu0 (!%p177_p10), %v1079_v7  ;;  %537 = vmatprep.mubr.f32.mxu1 (!%p177_p10), %v1079_v7  ;;  %p210_p11 = scmp.lt.s32.totalorder (!%p177_p10), %s887_s5, 63 }
  0x10   : > { %v931_v8 = vpack.c.bf16 (!%p177_p10), %v262_v4, %v260_v2  ;;  %v933_v9 = vpack.c.bf16 (!%p177_p10), %v267_v6, %v265_v5  ;;  %v264_v10 = vld [vmem:[%s1482_s1 + $0x20] sm:$0xff] (!%p177_p10)  ;;  %v266_v11 = vld [vmem:[%s1482_s1 + $0x30] sm:$0xff] (!%p177_p10)  ;;  %v271_v46 = vshrl.u32 (!%p177_p10), %v270_v45, 7  ;;  %s928_s8 = sshll.u32 (!%p177_p10), %s1069_s15, 13  ;;  %s1080_s21 = smov (!%p177_p10), [#allocation2]  }
  0x11   : > { %930 = vmatprep.subr.bf16.mxu0 (!%p177_p10), %v929_v3  ;;  %937 = vmatprep.subr.bf16.mxu1 (!%p177_p10), %v929_v3  ;;  %v935_v12 = vpack.c.bf16 (!%p177_p10), %v266_v11, %v264_v10  ;;  %v268_v48 = vld [vmem:[%s1483_s2] sm:$0x3] (!%p177_p10)  ;;  %s1425_s11 = scalar_lea.hbm (!%p177_p10), %s1484_s3, %s928_s8  ;;  %s1003_s23 = sshll.u32 (!%p177_p10), %s1080_s21, 4  ;;  %s1004_s23 = int_to_ptr.vmem [resolvable:$false] %s1003_s23 }
  0x12   : > { %932 = vmatpush1.bf16.msra.mxu0 (!%p177_p10), %v931_v8  ;;  %939 = vmatpush1.bf16.msra.mxu1 (!%p177_p10), %v931_v8  ;;  %v272_v47 = vsub.s32 (!%p177_p10), 0, %v271_v46  ;;  %v276_v49 = vsub.s32 (!%p177_p10), 1, %v271_v46 }
  0x13   : > { %934 = vmatprep.subr.bf16.mxu0 (!%p177_p10), %v933_v9  ;;  %938 = vmatprep.subr.bf16.mxu1 (!%p177_p10), %v933_v9 }
  0x14   : > { %v1288_v50 = vrot.slane (!%p177_p10), %v268_v48, %v272_v47  ;;  %v1290_v51 = vrot.slane (!%p177_p10), %v268_v48, %v276_v49 }
  0x16   : > { %s1495_s5 = smov (!%p210_p11, %s887_s5), 63  ;;  %936 = vmatpush1.bf16.msra.mxu0 %v935_v12  ;;  %940 = vmatpush1.bf16.msra.mxu1 %v935_v12 }
  0x17   : > { %s888_s26 = sshll.u32 %s1495_s5, 3  ;;  %s206_s5 = sand.u32 1, %s1061_s13  }
  0x18   : > { %s1188_s29 = scalar_lea.vmem %s1481_s0, %s888_s26  ;;  %s886_s6 = sshll.u32 %s206_s5, 9 }
  0x19   : > { %v228_v13 = vld [vmem:[%s1188_s29] sm:$0xff]  ;;  %v229_v15 = vld [vmem:[%s1188_s29 + $0x8] sm:$0xff]  ;;  %v230_v17 = vld [vmem:[%s1188_s29 + $0x10] sm:$0xff]  ;;  %s1298_s7 = scalar_lea.vmem [#allocation2], %s886_s6  ;;  %s1435_s18 = scalar_lea.sflag [#allocation3], %s206_s5 }
  0x1a   : > { %v244_v14 = vld [vmem:[%s1188_s29 + $0x80] sm:$0xff]  ;;  %889 = vmatmul.mubr.msk.f32.vlgmr.msra.gmra.mrb[0].mxu0 %vm280_vm0, %v228_v13  ;;  %v245_v16 = vld [vmem:[%s1188_s29 + $0x88] sm:$0xff]  ;;  %v246_v18 = vld [vmem:[%s1188_s29 + $0x90] sm:$0xff]  ;;  %s779_s9 = sshll.u32 %s1298_s7, 4  ;;  %s1005_s26 = scalar_lea.vmem %s1004_s23, 16384  ;;  %s1427_s9 = int_to_ptr.vmem [resolvable:$true] %s779_s9 }
  0x1b   : > { %905 = vmatmul.mubr.msk.f32.vlgmr.msra.gmra.mrb[0].mxu1 %vm280_vm0, %v244_v14  ;;  %447 = vmatprep.mubr.f32.mxu0 %v1079_v7  ;;  %v231_v19 = vld [vmem:[%s1188_s29 + $0x18] sm:$0xff]  ;;  %v232_v21 = vld [vmem:[%s1188_s29 + $0x20] sm:$0xff]  ;;  %v233_v23 = vld [vmem:[%s1188_s29 + $0x28] sm:$0xff]  ;;  %s999_s19 = scalar_lea.vmem %s1427_s9, 8192  ;;  %p1006_p1 = scmp.lt.s32.totalorder %s1427_s9, %s1004_s23 }
  0x1c   : > { %543 = vmatprep.mubr.f32.mxu1 %v1079_v7  ;;  %v247_v20 = vld [vmem:[%s1188_s29 + $0x98] sm:$0xff]  ;;  %v248_v22 = vld [vmem:[%s1188_s29 + $0xa0] sm:$0xff]  ;;  %v249_v24 = vld [vmem:[%s1188_s29 + $0xa8] sm:$0xff]  ;;  %p1000_p12 = scmp.ne.s32.totalorder %s1427_s9, %s999_s19  ;;  %p1007_p2 = scmp.lt.s32.totalorder %s1005_s26, %s999_s19 }
  0x1d   : > { %v234_v25 = vld [vmem:[%s1188_s29 + $0x30] sm:$0xff]  ;;  %v235_v27 = vld [vmem:[%s1188_s29 + $0x38] sm:$0xff]  ;;  %v236_v29 = vld [vmem:[%s1188_s29 + $0x40] sm:$0xff] }
  0x1e   : > { %890 = vmatmul.mubr.msk.f32.gmra.mrb[2].mxu0 %vm280_vm0, %v229_v15  ;;  %v250_v26 = vld [vmem:[%s1188_s29 + $0xb0] sm:$0xff]  ;;  %v251_v28 = vld [vmem:[%s1188_s29 + $0xb8] sm:$0xff]  ;;  %v252_v30 = vld [vmem:[%s1188_s29 + $0xc0] sm:$0xff]  ;;  %p1001_p13 = pnand %p1000_p12, %p1143_p4  ;;  %p1008_p3 = por %p1007_p2, %p1006_p1 }
  0x1f   : > { %906 = vmatmul.mubr.msk.f32.gmra.mrb[2].mxu1 %vm280_vm0, %v245_v16  ;;  %453 = vmatprep.mubr.f32.mxu0 %v1079_v7  ;;  %v237_v31 = vld [vmem:[%s1188_s29 + $0x48] sm:$0xff]  ;;  %v238_v33 = vld [vmem:[%s1188_s29 + $0x50] sm:$0xff]  ;;  %v239_v35 = vld [vmem:[%s1188_s29 + $0x58] sm:$0xff] }
  0x20   : > { %549 = vmatprep.mubr.f32.mxu1 %v1079_v7  ;;  %v253_v32 = vld [vmem:[%s1188_s29 + $0xc8] sm:$0xff]  ;;  %v254_v34 = vld [vmem:[%s1188_s29 + $0xd0] sm:$0xff]  ;;  %v255_v36 = vld [vmem:[%s1188_s29 + $0xd8] sm:$0xff]  ;;  %p1002_p0 = pneg %p1001_p13 }
  0x21   : > { %v240_v37 = vld [vmem:[%s1188_s29 + $0x60] sm:$0xff]  ;;  %v241_v39 = vld [vmem:[%s1188_s29 + $0x68] sm:$0xff]  ;;  %v242_v41 = vld [vmem:[%s1188_s29 + $0x70] sm:$0xff] }
  0x22   : > { %891 = vmatmul.mubr.msk.f32.gmra.mrb[4].mxu0 %vm280_vm0, %v230_v17  ;;  %v256_v38 = vld [vmem:[%s1188_s29 + $0xe0] sm:$0xff]  ;;  %v257_v40 = vld [vmem:[%s1188_s29 + $0xe8] sm:$0xff]  ;;  %v258_v42 = vld [vmem:[%s1188_s29 + $0xf0] sm:$0xff]  ;;  %p1009_p5 = pnand %p1008_p3, %p1002_p0 }
  0x23   : > { %907 = vmatmul.mubr.msk.f32.gmra.mrb[4].mxu1 %vm280_vm0, %v246_v18  ;;  %459 = vmatprep.mubr.f32.mxu0 %v1079_v7  ;;  %v243_v43 = vld [vmem:[%s1188_s29 + $0x78] sm:$0xff] }
  0x24   : > { %555 = vmatprep.mubr.f32.mxu1 %v1079_v7  ;;  %v259_v44 = vld [vmem:[%s1188_s29 + $0xf8] sm:$0xff] }
  0x26   : > { %892 = vmatmul.mubr.msk.f32.gmra.mrb[6].mxu0 %vm280_vm0, %v231_v19 }
  0x27   : > { %908 = vmatmul.mubr.msk.f32.gmra.mrb[6].mxu1 %vm280_vm0, %v247_v20  ;;  %465 = vmatprep.mubr.f32.mxu0 %v1079_v7 }
  0x28   : > { %561 = vmatprep.mubr.f32.mxu1 %v1079_v7 }
  0x2a   : > { %893 = vmatmul.mubr.msk.f32.gmra.mrb[8].mxu0 %vm280_vm0, %v232_v21 }
  0x2b   : > { %909 = vmatmul.mubr.msk.f32.gmra.mrb[8].mxu1 %vm280_vm0, %v248_v22  ;;  %471 = vmatprep.mubr.f32.mxu0 %v1079_v7 }
  0x2c   : > { %567 = vmatprep.mubr.f32.mxu1 %v1079_v7 }
  0x2e   : > { %894 = vmatmul.mubr.msk.f32.gmra.mrb[10].mxu0 %vm280_vm0, %v233_v23 }
  0x2f   : > { %910 = vmatmul.mubr.msk.f32.gmra.mrb[10].mxu1 %vm280_vm0, %v249_v24  ;;  %477 = vmatprep.mubr.f32.mxu0 %v1079_v7 }
  0x30   : > { %573 = vmatprep.mubr.f32.mxu1 %v1079_v7 }
  0x32   : > { %895 = vmatmul.mubr.msk.f32.gmra.mrb[12].mxu0 %vm280_vm0, %v234_v25 }
  0x33   : > { %911 = vmatmul.mubr.msk.f32.gmra.mrb[12].mxu1 %vm280_vm0, %v250_v26  ;;  %483 = vmatprep.mubr.f32.mxu0 %v1079_v7 }
  0x34   : > { %579 = vmatprep.mubr.f32.mxu1 %v1079_v7 }
  0x36   : > { %896 = vmatmul.mubr.msk.f32.gmra.mrb[14].mxu0 %vm280_vm0, %v235_v27 }
  0x37   : > { %912 = vmatmul.mubr.msk.f32.gmra.mrb[14].mxu1 %vm280_vm0, %v251_v28  ;;  %489 = vmatprep.mubr.f32.mxu0 %v1079_v7 }
  0x38   : > { %585 = vmatprep.mubr.f32.mxu1 %v1079_v7 }
  0x3a   : > { %897 = vmatmul.mubr.msk.f32.gmra.mrb[16].mxu0 %vm280_vm0, %v236_v29 }
  0x3b   : > { %913 = vmatmul.mubr.msk.f32.gmra.mrb[16].mxu1 %vm280_vm0, %v252_v30  ;;  %495 = vmatprep.mubr.f32.mxu0 %v1079_v7 }
  0x3c   : > { %591 = vmatprep.mubr.f32.mxu1 %v1079_v7 }
  0x3e   : > { %898 = vmatmul.mubr.msk.f32.gmra.mrb[18].mxu0 %vm280_vm0, %v237_v31 }
  0x3f   : > { %914 = vmatmul.mubr.msk.f32.gmra.mrb[18].mxu1 %vm280_vm0, %v253_v32  ;;  %501 = vmatprep.mubr.f32.mxu0 %v1079_v7 }
  0x40   : > { %597 = vmatprep.mubr.f32.mxu1 %v1079_v7 }
  0x42   : > { %899 = vmatmul.mubr.msk.f32.gmra.mrb[20].mxu0 %vm280_vm0, %v238_v33 }
  0x43   : > { %915 = vmatmul.mubr.msk.f32.gmra.mrb[20].mxu1 %vm280_vm0, %v254_v34  ;;  %507 = vmatprep.mubr.f32.mxu0 %v1079_v7 }
  0x44   : > { %603 = vmatprep.mubr.f32.mxu1 %v1079_v7 }
  0x46   : > { %900 = vmatmul.mubr.msk.f32.gmra.mrb[22].mxu0 %vm280_vm0, %v239_v35 }
  0x47   : > { %916 = vmatmul.mubr.msk.f32.gmra.mrb[22].mxu1 %vm280_vm0, %v255_v36  ;;  %513 = vmatprep.mubr.f32.mxu0 %v1079_v7 }
  0x48   : > { %609 = vmatprep.mubr.f32.mxu1 %v1079_v7 }
  0x4a   : > { %901 = vmatmul.mubr.msk.f32.gmra.mrb[24].mxu0 %vm280_vm0, %v240_v37 }
  0x4b   : > { %917 = vmatmul.mubr.msk.f32.gmra.mrb[24].mxu1 %vm280_vm0, %v256_v38  ;;  %519 = vmatprep.mubr.f32.mxu0 %v1079_v7 }
  0x4c   : > { %615 = vmatprep.mubr.f32.mxu1 %v1079_v7 }
  0x4e   : > { %902 = vmatmul.mubr.msk.f32.gmra.mrb[26].mxu0 %vm280_vm0, %v241_v39 }
  0x4f   : > { %918 = vmatmul.mubr.msk.f32.gmra.mrb[26].mxu1 %vm280_vm0, %v257_v40  ;;  %525 = vmatprep.mubr.f32.mxu0 %v1079_v7 }
  0x50   : > { %621 = vmatprep.mubr.f32.mxu1 %v1079_v7 }
  0x52   : > { %903 = vmatmul.mubr.msk.f32.gmra.mrb[28].mxu0 %vm280_vm0, %v242_v41 }
  0x53   : > { %919 = vmatmul.mubr.msk.f32.gmra.mrb[28].mxu1 %vm280_vm0, %v258_v42  ;;  %531 = vmatprep.mubr.f32.mxu0 %v1079_v7 }
  0x54   : > { %627 = vmatprep.mubr.f32.mxu1 %v1079_v7 }
  0x56   : > { %904 = vmatmul.mubr.msk.f32.gmra.mrb[30].mxu0 %vm280_vm0, %v243_v43 }
  0x57   : > { %920 = vmatmul.mubr.msk.f32.gmra.mrb[30].mxu1 %vm280_vm0, %v259_v44 }
  0xed   : > { %v443_v52 = vpop.f32.mrb[0].mxu0 }
  0xee   : > { %v539_v53 = vpop.f32.mrb[0].mxu1  ;;  %v444_v54 = vadd.f32 %v443_v52, %v1288_v50  ;;  %v445_v56 = vpop.f32.mrb[1].mxu0 }
  0xef   : > { %v540_v55 = vadd.f32 %v539_v53, %v1288_v50  ;;  %v541_v57 = vpop.f32.mrb[1].mxu1  ;;  %v446_v58 = vadd.f32 %v445_v56, %v1290_v51 }
  0xf0   : > { %v542_v59 = vadd.f32 %v541_v57, %v1290_v51  ;;  %v634_v60 = vmax.f32 %v444_v54, 0.0 }
  0xf1   : > { %v666_v61 = vmax.f32 %v540_v55, 0.0  ;;  %v635_v62 = vmax.f32 %v446_v58, 0.0  ;;  %v449_v0 = vpop.f32.mrb[2].mxu0 }
  0xf2   : > { %v667_v63 = vmax.f32 %v542_v59, 0.0  ;;  %v545_v1 = vpop.f32.mrb[2].mxu1  ;;  %698 = vst [vmem:[%s1298_s7] sm:$0xff] %v634_v60  ;;  %v450_v2 = vadd.f32 %v449_v0, %v1288_v50  ;;  %v451_v4 = vpop.f32.mrb[3].mxu0 }
  0xf3   : > { %730 = vst [vmem:[%s1298_s7 + $0x100] sm:$0xff] %v666_v61  ;;  %v546_v3 = vadd.f32 %v545_v1, %v1288_v50  ;;  %v547_v5 = vpop.f32.mrb[3].mxu1  ;;  %699 = vst [vmem:[%s1298_s7 + $0x8] sm:$0xff] %v635_v62  ;;  %v452_v6 = vadd.f32 %v451_v4, %v1290_v51 }
  0xf4   : > { %731 = vst [vmem:[%s1298_s7 + $0x108] sm:$0xff] %v667_v63  ;;  %v548_v7 = vadd.f32 %v547_v5, %v1290_v51  ;;  %v636_v8 = vmax.f32 %v450_v2, 0.0 }
  0xf5   : > { %v668_v9 = vmax.f32 %v546_v3, 0.0  ;;  %v637_v10 = vmax.f32 %v452_v6, 0.0  ;;  %v455_v12 = vpop.f32.mrb[4].mxu0 }
  0xf6   : > { %v669_v11 = vmax.f32 %v548_v7, 0.0  ;;  %v551_v13 = vpop.f32.mrb[4].mxu1  ;;  %700 = vst [vmem:[%s1298_s7 + $0x10] sm:$0xff] %v636_v8  ;;  %v456_v14 = vadd.f32 %v455_v12, %v1288_v50  ;;  %v457_v16 = vpop.f32.mrb[5].mxu0 }
  0xf7   : > { %732 = vst [vmem:[%s1298_s7 + $0x110] sm:$0xff] %v668_v9  ;;  %v552_v15 = vadd.f32 %v551_v13, %v1288_v50  ;;  %v553_v17 = vpop.f32.mrb[5].mxu1  ;;  %701 = vst [vmem:[%s1298_s7 + $0x18] sm:$0xff] %v637_v10  ;;  %v458_v18 = vadd.f32 %v457_v16, %v1290_v51 }
  0xf8   : > { %733 = vst [vmem:[%s1298_s7 + $0x118] sm:$0xff] %v669_v11  ;;  %v554_v19 = vadd.f32 %v553_v17, %v1290_v51  ;;  %v638_v20 = vmax.f32 %v456_v14, 0.0 }
  0xf9   : > { %v670_v21 = vmax.f32 %v552_v15, 0.0  ;;  %v639_v22 = vmax.f32 %v458_v18, 0.0  ;;  %v461_v24 = vpop.f32.mrb[6].mxu0 }
  0xfa   : > { %v671_v23 = vmax.f32 %v554_v19, 0.0  ;;  %v557_v25 = vpop.f32.mrb[6].mxu1  ;;  %702 = vst [vmem:[%s1298_s7 + $0x20] sm:$0xff] %v638_v20  ;;  %v462_v26 = vadd.f32 %v461_v24, %v1288_v50  ;;  %v463_v28 = vpop.f32.mrb[7].mxu0 }
  0xfb   : > { %734 = vst [vmem:[%s1298_s7 + $0x120] sm:$0xff] %v670_v21  ;;  %v558_v27 = vadd.f32 %v557_v25, %v1288_v50  ;;  %v559_v29 = vpop.f32.mrb[7].mxu1  ;;  %703 = vst [vmem:[%s1298_s7 + $0x28] sm:$0xff] %v639_v22  ;;  %v464_v30 = vadd.f32 %v463_v28, %v1290_v51 }
  0xfc   : > { %735 = vst [vmem:[%s1298_s7 + $0x128] sm:$0xff] %v671_v23  ;;  %v560_v31 = vadd.f32 %v559_v29, %v1290_v51  ;;  %v640_v32 = vmax.f32 %v462_v26, 0.0 }
  0xfd   : > { %v672_v33 = vmax.f32 %v558_v27, 0.0  ;;  %v641_v34 = vmax.f32 %v464_v30, 0.0  ;;  %v467_v36 = vpop.f32.mrb[8].mxu0 }
  0xfe   : > { %v673_v35 = vmax.f32 %v560_v31, 0.0  ;;  %v563_v37 = vpop.f32.mrb[8].mxu1  ;;  %704 = vst [vmem:[%s1298_s7 + $0x30] sm:$0xff] %v640_v32  ;;  %v468_v38 = vadd.f32 %v467_v36, %v1288_v50  ;;  %v469_v40 = vpop.f32.mrb[9].mxu0 }
  0xff   : > { %736 = vst [vmem:[%s1298_s7 + $0x130] sm:$0xff] %v672_v33  ;;  %v564_v39 = vadd.f32 %v563_v37, %v1288_v50  ;;  %v565_v41 = vpop.f32.mrb[9].mxu1  ;;  %705 = vst [vmem:[%s1298_s7 + $0x38] sm:$0xff] %v641_v34  ;;  %v470_v42 = vadd.f32 %v469_v40, %v1290_v51 }
 0x100   : > { %737 = vst [vmem:[%s1298_s7 + $0x138] sm:$0xff] %v673_v35  ;;  %v566_v43 = vadd.f32 %v565_v41, %v1290_v51  ;;  %v642_v44 = vmax.f32 %v468_v38, 0.0 }
 0x101   : > { %v674_v45 = vmax.f32 %v564_v39, 0.0  ;;  %v643_v46 = vmax.f32 %v470_v42, 0.0  ;;  %v473_v48 = vpop.f32.mrb[10].mxu0 }
 0x102   : > { %v675_v47 = vmax.f32 %v566_v43, 0.0  ;;  %v569_v49 = vpop.f32.mrb[10].mxu1  ;;  %706 = vst [vmem:[%s1298_s7 + $0x40] sm:$0xff] %v642_v44  ;;  %v474_v52 = vadd.f32 %v473_v48, %v1288_v50  ;;  %v475_v54 = vpop.f32.mrb[11].mxu0 }
 0x103   : > { %738 = vst [vmem:[%s1298_s7 + $0x140] sm:$0xff] %v674_v45  ;;  %v570_v53 = vadd.f32 %v569_v49, %v1288_v50  ;;  %v571_v55 = vpop.f32.mrb[11].mxu1  ;;  %707 = vst [vmem:[%s1298_s7 + $0x48] sm:$0xff] %v643_v46  ;;  %v476_v56 = vadd.f32 %v475_v54, %v1290_v51 }
 0x104   : > { %739 = vst [vmem:[%s1298_s7 + $0x148] sm:$0xff] %v675_v47  ;;  %v572_v57 = vadd.f32 %v571_v55, %v1290_v51  ;;  %v644_v58 = vmax.f32 %v474_v52, 0.0 }
 0x105   : > { %v676_v59 = vmax.f32 %v570_v53, 0.0  ;;  %v645_v60 = vmax.f32 %v476_v56, 0.0  ;;  %v479_v62 = vpop.f32.mrb[12].mxu0 }
 0x106   : > { %v677_v61 = vmax.f32 %v572_v57, 0.0  ;;  %v575_v63 = vpop.f32.mrb[12].mxu1  ;;  %708 = vst [vmem:[%s1298_s7 + $0x50] sm:$0xff] %v644_v58  ;;  %v480_v0 = vadd.f32 %v479_v62, %v1288_v50  ;;  %v481_v2 = vpop.f32.mrb[13].mxu0 }
 0x107   : > { %740 = vst [vmem:[%s1298_s7 + $0x150] sm:$0xff] %v676_v59  ;;  %v576_v1 = vadd.f32 %v575_v63, %v1288_v50  ;;  %v577_v3 = vpop.f32.mrb[13].mxu1  ;;  %709 = vst [vmem:[%s1298_s7 + $0x58] sm:$0xff] %v645_v60  ;;  %v482_v4 = vadd.f32 %v481_v2, %v1290_v51 }
 0x108   : > { %741 = vst [vmem:[%s1298_s7 + $0x158] sm:$0xff] %v677_v61  ;;  %v578_v5 = vadd.f32 %v577_v3, %v1290_v51  ;;  %v646_v6 = vmax.f32 %v480_v0, 0.0 }
 0x109   : > { %v678_v7 = vmax.f32 %v576_v1, 0.0  ;;  %v647_v8 = vmax.f32 %v482_v4, 0.0  ;;  %v485_v10 = vpop.f32.mrb[14].mxu0 }
 0x10a   : > { %v679_v9 = vmax.f32 %v578_v5, 0.0  ;;  %v581_v11 = vpop.f32.mrb[14].mxu1  ;;  %710 = vst [vmem:[%s1298_s7 + $0x60] sm:$0xff] %v646_v6  ;;  %v486_v12 = vadd.f32 %v485_v10, %v1288_v50  ;;  %v487_v14 = vpop.f32.mrb[15].mxu0 }
 0x10b   : > { %742 = vst [vmem:[%s1298_s7 + $0x160] sm:$0xff] %v678_v7  ;;  %v582_v13 = vadd.f32 %v581_v11, %v1288_v50  ;;  %v583_v15 = vpop.f32.mrb[15].mxu1  ;;  %711 = vst [vmem:[%s1298_s7 + $0x68] sm:$0xff] %v647_v8  ;;  %v488_v16 = vadd.f32 %v487_v14, %v1290_v51 }
 0x10c   : > { %743 = vst [vmem:[%s1298_s7 + $0x168] sm:$0xff] %v679_v9  ;;  %v584_v17 = vadd.f32 %v583_v15, %v1290_v51  ;;  %v648_v18 = vmax.f32 %v486_v12, 0.0 }
 0x10d   : > { %v680_v19 = vmax.f32 %v582_v13, 0.0  ;;  %v649_v20 = vmax.f32 %v488_v16, 0.0  ;;  %v491_v22 = vpop.f32.mrb[16].mxu0 }
 0x10e   : > { %v681_v21 = vmax.f32 %v584_v17, 0.0  ;;  %v587_v23 = vpop.f32.mrb[16].mxu1  ;;  %712 = vst [vmem:[%s1298_s7 + $0x70] sm:$0xff] %v648_v18  ;;  %v492_v24 = vadd.f32 %v491_v22, %v1288_v50  ;;  %v493_v26 = vpop.f32.mrb[17].mxu0 }
 0x10f   : > { %744 = vst [vmem:[%s1298_s7 + $0x170] sm:$0xff] %v680_v19  ;;  %v588_v25 = vadd.f32 %v587_v23, %v1288_v50  ;;  %v589_v27 = vpop.f32.mrb[17].mxu1  ;;  %713 = vst [vmem:[%s1298_s7 + $0x78] sm:$0xff] %v649_v20  ;;  %v494_v28 = vadd.f32 %v493_v26, %v1290_v51 }
 0x110   : > { %745 = vst [vmem:[%s1298_s7 + $0x178] sm:$0xff] %v681_v21  ;;  %v590_v29 = vadd.f32 %v589_v27, %v1290_v51  ;;  %v650_v30 = vmax.f32 %v492_v24, 0.0 }
 0x111   : > { %v682_v31 = vmax.f32 %v588_v25, 0.0  ;;  %v651_v32 = vmax.f32 %v494_v28, 0.0  ;;  %v497_v34 = vpop.f32.mrb[18].mxu0 }
 0x112   : > { %v683_v33 = vmax.f32 %v590_v29, 0.0  ;;  %v593_v35 = vpop.f32.mrb[18].mxu1  ;;  %714 = vst [vmem:[%s1298_s7 + $0x80] sm:$0xff] %v650_v30  ;;  %v498_v36 = vadd.f32 %v497_v34, %v1288_v50  ;;  %v499_v38 = vpop.f32.mrb[19].mxu0 }
 0x113   : > { %746 = vst [vmem:[%s1298_s7 + $0x180] sm:$0xff] %v682_v31  ;;  %v594_v37 = vadd.f32 %v593_v35, %v1288_v50  ;;  %v595_v39 = vpop.f32.mrb[19].mxu1  ;;  %715 = vst [vmem:[%s1298_s7 + $0x88] sm:$0xff] %v651_v32  ;;  %v500_v40 = vadd.f32 %v499_v38, %v1290_v51 }
 0x114   : > { %747 = vst [vmem:[%s1298_s7 + $0x188] sm:$0xff] %v683_v33  ;;  %v596_v41 = vadd.f32 %v595_v39, %v1290_v51  ;;  %v652_v42 = vmax.f32 %v498_v36, 0.0 }
 0x115   : > { %v684_v43 = vmax.f32 %v594_v37, 0.0  ;;  %v653_v44 = vmax.f32 %v500_v40, 0.0  ;;  %v503_v46 = vpop.f32.mrb[20].mxu0 }
 0x116   : > { %v685_v45 = vmax.f32 %v596_v41, 0.0  ;;  %v599_v47 = vpop.f32.mrb[20].mxu1  ;;  %716 = vst [vmem:[%s1298_s7 + $0x90] sm:$0xff] %v652_v42  ;;  %v504_v48 = vadd.f32 %v503_v46, %v1288_v50  ;;  %v505_v52 = vpop.f32.mrb[21].mxu0 }
 0x117   : > { %748 = vst [vmem:[%s1298_s7 + $0x190] sm:$0xff] %v684_v43  ;;  %v600_v49 = vadd.f32 %v599_v47, %v1288_v50  ;;  %v601_v53 = vpop.f32.mrb[21].mxu1  ;;  %717 = vst [vmem:[%s1298_s7 + $0x98] sm:$0xff] %v653_v44  ;;  %v506_v54 = vadd.f32 %v505_v52, %v1290_v51 }
 0x118   : > { %749 = vst [vmem:[%s1298_s7 + $0x198] sm:$0xff] %v685_v45  ;;  %v602_v55 = vadd.f32 %v601_v53, %v1290_v51  ;;  %v654_v56 = vmax.f32 %v504_v48, 0.0 }
 0x119   : > { %v686_v57 = vmax.f32 %v600_v49, 0.0  ;;  %v655_v58 = vmax.f32 %v506_v54, 0.0  ;;  %v509_v60 = vpop.f32.mrb[22].mxu0 }
 0x11a   : > { %v687_v59 = vmax.f32 %v602_v55, 0.0  ;;  %v605_v61 = vpop.f32.mrb[22].mxu1  ;;  %718 = vst [vmem:[%s1298_s7 + $0xa0] sm:$0xff] %v654_v56  ;;  %v510_v62 = vadd.f32 %v509_v60, %v1288_v50  ;;  %v511_v0 = vpop.f32.mrb[23].mxu0 }
 0x11b   : > { %750 = vst [vmem:[%s1298_s7 + $0x1a0] sm:$0xff] %v686_v57  ;;  %v606_v63 = vadd.f32 %v605_v61, %v1288_v50  ;;  %v607_v1 = vpop.f32.mrb[23].mxu1  ;;  %719 = vst [vmem:[%s1298_s7 + $0xa8] sm:$0xff] %v655_v58  ;;  %v512_v2 = vadd.f32 %v511_v0, %v1290_v51 }
 0x11c   : > { %751 = vst [vmem:[%s1298_s7 + $0x1a8] sm:$0xff] %v687_v59  ;;  %v608_v3 = vadd.f32 %v607_v1, %v1290_v51  ;;  %v656_v4 = vmax.f32 %v510_v62, 0.0 }
 0x11d   : > { %v688_v5 = vmax.f32 %v606_v63, 0.0  ;;  %v657_v6 = vmax.f32 %v512_v2, 0.0  ;;  %v515_v8 = vpop.f32.mrb[24].mxu0 }
 0x11e   : > { %v689_v7 = vmax.f32 %v608_v3, 0.0  ;;  %v611_v9 = vpop.f32.mrb[24].mxu1  ;;  %720 = vst [vmem:[%s1298_s7 + $0xb0] sm:$0xff] %v656_v4  ;;  %v516_v10 = vadd.f32 %v515_v8, %v1288_v50  ;;  %v517_v12 = vpop.f32.mrb[25].mxu0 }
 0x11f   : > { %752 = vst [vmem:[%s1298_s7 + $0x1b0] sm:$0xff] %v688_v5  ;;  %v612_v11 = vadd.f32 %v611_v9, %v1288_v50  ;;  %v613_v13 = vpop.f32.mrb[25].mxu1  ;;  %721 = vst [vmem:[%s1298_s7 + $0xb8] sm:$0xff] %v657_v6  ;;  %v518_v14 = vadd.f32 %v517_v12, %v1290_v51 }
 0x120   : > { %753 = vst [vmem:[%s1298_s7 + $0x1b8] sm:$0xff] %v689_v7  ;;  %v614_v15 = vadd.f32 %v613_v13, %v1290_v51  ;;  %v658_v16 = vmax.f32 %v516_v10, 0.0 }
 0x121   : > { %v690_v17 = vmax.f32 %v612_v11, 0.0  ;;  %v659_v18 = vmax.f32 %v518_v14, 0.0  ;;  %v521_v20 = vpop.f32.mrb[26].mxu0 }
 0x122   : > { %v691_v19 = vmax.f32 %v614_v15, 0.0  ;;  %v617_v21 = vpop.f32.mrb[26].mxu1  ;;  %722 = vst [vmem:[%s1298_s7 + $0xc0] sm:$0xff] %v658_v16  ;;  %v522_v22 = vadd.f32 %v521_v20, %v1288_v50  ;;  %v523_v24 = vpop.f32.mrb[27].mxu0 }
 0x123   : > { %754 = vst [vmem:[%s1298_s7 + $0x1c0] sm:$0xff] %v690_v17  ;;  %v618_v23 = vadd.f32 %v617_v21, %v1288_v50  ;;  %v619_v25 = vpop.f32.mrb[27].mxu1  ;;  %723 = vst [vmem:[%s1298_s7 + $0xc8] sm:$0xff] %v659_v18  ;;  %v524_v26 = vadd.f32 %v523_v24, %v1290_v51 }
 0x124   : > { %755 = vst [vmem:[%s1298_s7 + $0x1c8] sm:$0xff] %v691_v19  ;;  %v620_v27 = vadd.f32 %v619_v25, %v1290_v51  ;;  %v660_v28 = vmax.f32 %v522_v22, 0.0 }
 0x125   : > { %v692_v29 = vmax.f32 %v618_v23, 0.0  ;;  %v661_v30 = vmax.f32 %v524_v26, 0.0  ;;  %v527_v32 = vpop.f32.mrb[28].mxu0 }
 0x126   : > { %v693_v31 = vmax.f32 %v620_v27, 0.0  ;;  %v623_v33 = vpop.f32.mrb[28].mxu1  ;;  %724 = vst [vmem:[%s1298_s7 + $0xd0] sm:$0xff] %v660_v28  ;;  %v528_v34 = vadd.f32 %v527_v32, %v1288_v50  ;;  %v529_v36 = vpop.f32.mrb[29].mxu0 }
 0x127   : > { %756 = vst [vmem:[%s1298_s7 + $0x1d0] sm:$0xff] %v692_v29  ;;  %v624_v35 = vadd.f32 %v623_v33, %v1288_v50  ;;  %v625_v37 = vpop.f32.mrb[29].mxu1  ;;  %725 = vst [vmem:[%s1298_s7 + $0xd8] sm:$0xff] %v661_v30  ;;  %v530_v38 = vadd.f32 %v529_v36, %v1290_v51 }
 0x128   : > { %757 = vst [vmem:[%s1298_s7 + $0x1d8] sm:$0xff] %v693_v31  ;;  %v626_v39 = vadd.f32 %v625_v37, %v1290_v51  ;;  %v662_v40 = vmax.f32 %v528_v34, 0.0 }
 0x129   : > { %v694_v41 = vmax.f32 %v624_v35, 0.0  ;;  %v663_v42 = vmax.f32 %v530_v38, 0.0  ;;  %v533_v44 = vpop.f32.mrb[30].mxu0 }
 0x12a   : > { %v695_v43 = vmax.f32 %v626_v39, 0.0  ;;  %v629_v45 = vpop.f32.mrb[30].mxu1  ;;  %726 = vst [vmem:[%s1298_s7 + $0xe0] sm:$0xff] %v662_v40  ;;  %v534_v46 = vadd.f32 %v533_v44, %v1288_v50  ;;  %v535_v48 = vpop.f32.mrb[31].mxu0 }
 0x12b   : > { %758 = vst [vmem:[%s1298_s7 + $0x1e0] sm:$0xff] %v694_v41  ;;  %v630_v47 = vadd.f32 %v629_v45, %v1288_v50  ;;  %v631_v49 = vpop.f32.mrb[31].mxu1  ;;  %727 = vst [vmem:[%s1298_s7 + $0xe8] sm:$0xff] %v663_v42  ;;  %v536_v52 = vadd.f32 %v535_v48, %v1290_v51 }
 0x12c   : > { %759 = vst [vmem:[%s1298_s7 + $0x1e8] sm:$0xff] %v695_v43  ;;  %v632_v53 = vadd.f32 %v631_v49, %v1290_v51  ;;  %v664_v54 = vmax.f32 %v534_v46, 0.0 }
 0x12d   : > { %v696_v55 = vmax.f32 %v630_v47, 0.0  ;;  %v665_v50 = vmax.f32 %v536_v52, 0.0 }
 0x12e   : > { %v697_v56 = vmax.f32 %v632_v53, 0.0  ;;  %728 = vst [vmem:[%s1298_s7 + $0xf0] sm:$0xff] %v664_v54 }
 0x12f   : > { %760 = vst [vmem:[%s1298_s7 + $0x1f0] sm:$0xff] %v696_v55  ;;  %729 = vst [vmem:[%s1298_s7 + $0xf8] sm:$0xff] %v665_v50 }
 0x130   : > { %761 = vst [vmem:[%s1298_s7 + $0x1f8] sm:$0xff] %v697_v56 }
 0x131   : > { %1012 = shalt.err (!%p1009_p5)
}
 0x132   : > { %s1013_s27 = scalar_lea.hbm %s1425_s11, 8192  ;;  %s1017_s30 = scalar_lea.hbm %s1484_s3, 16384 }
 0x133   : > { %p1014_p6 = scmp.ne.s32.totalorder %s1425_s11, %s1013_s27  ;;  %p1018_p10 = scmp.lt.u32.totalorder %s1425_s11, %s1484_s3 }
 0x134   : > { %p1019_p11 = scmp.lt.u32.totalorder %s1017_s30, %s1013_s27  ;;  %p1021_p13 = scmp.lt.u32.totalorder %s1013_s27, %s1425_s11 }
 0x135   : > { %p1015_p7 = pnand %p1014_p6, %p1143_p4 }
 0x136   : > { %p1020_p12 = por %p1019_p11, %p1018_p10 }
 0x137   : > { %p1016_p9 = pneg %p1015_p7 }
 0x138   : > { %p1022_p0 = por %p1021_p13, %p1020_p12 }
 0x13a   : > { %p1023_p1 = pnand %p1022_p0, %p1016_p9 }
 0x13c   : > { %1026 = shalt.err (!%p1023_p1)
}
 0x13d   : > { %s1081_s6 = smov 256   ;;  %s1082_s7 = smov 16  }
 0x13e   : > { %941 = dma.vmem_to_hbm [thread:$0]  (%p1143_p4), %s1427_s9, 8192, %s1425_s11, %s1435_s18, %s1081_s6, %s1081_s6, %s1082_s7  }
 0x13f PF: > { %p947_p2 = scmp.ge.s32.totalorder %s1077_s17, 2  ;;  %s794_s8 = sand.u32 1, %s1057_s12  }
 0x140   : > { %s795_s15 = scalar_lea.sflag [#allocation3], %s794_s8 }
 0x141   : > { %p944_p3 = pnand %p947_p2, %p1150_p8 }
 0x143   : > { %1052 = dma.done.wait (!%p944_p3), %s795_s15, 8192  }
 0x144   : > { %1054 = vsyncadd (!%p944_p3), %s795_s15, 4294959104  ;;  %s16_s17 = sadd.s32 1, %s1077_s17   ;;  %s1487_s12 = smov %s1061_s13 }
 0x145   : > { %p13_p5 = scmp.ge.s32.totalorder %s16_s17, 4   ;;  %s1488_s13 = smov %s1065_s14 }
 0x146   : > { %s1489_s14 = smov %s1156_s25  ;;  %s1490_s15 = smov %s1073_s16 }
 0x147   : > { %s1491_s16 = smov %s1493_s20  ;;  %15 = sbr.rel (!%p13_p5) target bundleno = 4 (0x4), region = 73 }
 0x14e   :  { %800 = vsyncpa [#allocation3], 1 }
 0x14f   :  { %802 = vsyncpa [#allocation3 + $0x1], 1 }

</bundles_post_ra>
